<compile_context>
chip_gen: v6e
topology: v6e:2x2x1
jax: 0.10.0
libtpu: 0.0.40
codegen_flags: <defaults>
</compile_context>

<pallas_src>
import functools

import jax
import jax.numpy as jnp
from jax.experimental import pallas as pl
from jax.experimental.pallas import tpu as pltpu


def _full_spec(shape):
    return pl.BlockSpec(shape, lambda *_: (0,) * len(shape))


def _fused_gcn_kernel(num_layers, layer_dims, use_bf16, *refs):
    """Whole forward pass in one kernel.

    refs = (alpha(SMEM), adj, mask1, mask2, x, w_0 .. w_{L-1}, out)
    """
    alpha_ref = refs[0]
    adj_ref, m1_ref, m2_ref, x_ref = refs[1:5]
    w_refs = refs[5:5 + num_layers]
    out_ref = refs[5 + num_layers]

    # --- masked adjacency + symmetric normalization (no transpose, no iota-eye)
    a = adj_ref[...] * m1_ref[...] * m2_ref[...]            # (N, N) f32
    # row-sum of (A_m + I); >= 1 for a binary / non-negative adjacency,
    # so the torch `isinf -> 0` guard is provably dead and dropped.
    rowsum = jnp.sum(a, axis=1, keepdims=True) + 1.0        # (N, 1)
    dinv = jax.lax.rsqrt(rowsum)                            # (N, 1), EUP

    a_mm = a.astype(jnp.bfloat16) if use_bf16 else a

    def apply_norm_adj(v):
        # a_norm @ v == dinv * (A_m^T @ (dinv * v) + dinv * v)
        # A^T orientation via dot_general contracting A's dim 0 (MXU),
        # the +I contribution via the elementwise `+ u`.
        u = dinv * v
        u_mm = u.astype(jnp.bfloat16) if use_bf16 else u
        t = jax.lax.dot_general(
            a_mm, u_mm,
            dimension_numbers=(((0,), (0,)), ((), ())),
            preferred_element_type=jnp.float32)
        return dinv * (t + u)

    h = x_ref[...]
    for li in range(num_layers):
        f_in, f_out = layer_dims[li]
        w_mm = w_refs[li][...]
        if use_bf16:
            w_mm = w_mm.astype(jnp.bfloat16)

        def apply_weight(v, w_mm=w_mm):
            v_mm = v.astype(jnp.bfloat16) if use_bf16 else v
            return jax.lax.dot_general(
                v_mm, w_mm,
                dimension_numbers=(((1,), (0,)), ((), ())),
                preferred_element_type=jnp.float32)

        if f_in <= f_out:
            # N^2-scaled term runs at the narrower width F_in.
            h = apply_weight(apply_norm_adj(h))
        else:
            h = apply_norm_adj(apply_weight(h))

    # --- fused PReLU epilogue (single HBM store of the final activations)
    alpha = alpha_ref[0]
    h = jnp.where(h >= 0, h, alpha * h)
    out_ref[...] = h.astype(out_ref.dtype)


@functools.partial(jax.jit, static_argnames=("use_bf16",))
def net_gcn_baseline_forward(x, adj, weights, mask1, mask2, alpha,
                             use_bf16=False):
    """x: (1, N, F0); adj/mask1/mask2: (N, N); weights: tuple of (F_in, F_out);
    alpha: (1,) PReLU slope."""
    n = adj.shape[0]
    num_layers = len(weights)
    layer_dims = tuple((int(w.shape[0]), int(w.shape[1])) for w in weights)
    f0 = x.shape[-1]
    f_last = layer_dims[-1][1]

    kernel = functools.partial(_fused_gcn_kernel, num_layers, layer_dims,
                               use_bf16)

    in_specs = [pl.BlockSpec(memory_space=pltpu.MemorySpace.SMEM)]      # alpha
    in_specs += [_full_spec((n, n))] * 3                                # adj, m1, m2
    in_specs += [_full_spec((n, f0))]                                   # x
    in_specs += [_full_spec(tuple(w.shape)) for w in weights]           # weights

    h = pl.pallas_call(
        kernel,
        out_shape=jax.ShapeDtypeStruct((n, f_last), jnp.float32),
        in_specs=in_specs,
        out_specs=_full_spec((n, f_last)),
    )(alpha, adj, mask1, mask2, x[0], *weights)
    return h[None]                            # back to (1, N, F_last)


def _xavier_uniform(key, f_in, f_out):
    bound = (6.0 / (f_in + f_out)) ** 0.5
    return jax.random.uniform(key, (f_in, f_out), jnp.float32, -bound, bound)


def _reference(x, adj, weights, mask1, mask2, alpha):
    a = adj * mask1 * mask2 + jnp.eye(adj.shape[0], dtype=adj.dtype)
    d = jnp.sum(a, axis=1)
    dinv = jnp.where(d > 0, d ** -0.5, 0.0)
    a_norm = (a @ jnp.diag(dinv)).T @ jnp.diag(dinv)
    h = x[0]
    for w in weights:
        h = a_norm @ (h @ w)
    return jnp.where(h >= 0, h, alpha[0] * h)[None]


if __name__ == "__main__":
    key = jax.random.PRNGKey(0)
    k_adj, k_x, k_w0, k_w1 = jax.random.split(key, 4)

    N = 16
    embedding_dim = [32, 64, 16]              # -> 2 GCN layers

    # deterministic synthetic symmetric binary adjacency
    raw = jax.random.uniform(k_adj, (N, N))
    adj = ((raw + raw.T) > 1.0).astype(jnp.float32)

    # masks = binary nonzero pattern of adj (as in generate_adj_mask)
    mask1 = jnp.where(adj != 0, 1.0, 0.0).astype(jnp.float32)
    mask2 = jnp.where(adj != 0, 1.0, 0.0).astype(jnp.float32)

    # xavier-uniform linear weights stored as (F_in, F_out) so x @ w == Linear(x)
    weights = (
        _xavier_uniform(k_w0, embedding_dim[0], embedding_dim[1]),
        _xavier_uniform(k_w1, embedding_dim[1], embedding_dim[2]),
    )
    alpha = jnp.array([0.25], dtype=jnp.float32)   # PReLU default init

    x = jax.random.normal(k_x, (1, N, embedding_dim[0]), jnp.float32)

    ref = _reference(x, adj, weights, mask1, mask2, alpha)

    # f32 path (exact, default)
    out = net_gcn_baseline_forward(x, adj, weights, mask1, mask2, alpha)
    out = jax.block_until_ready(out)
    assert out.shape == (1, N, embedding_dim[-1])
    assert jnp.allclose(out, ref, atol=1e-4, rtol=1e-4), \
        float(jnp.max(jnp.abs(out - ref)))

    # bf16 matmul operands, f32 accumulation (v6e/v7x MXU fast path) — only a
    # loose sanity tolerance since operands are rounded to bf16.
    out_bf16 = net_gcn_baseline_forward(x, adj, weights, mask1, mask2, alpha,
                                        use_bf16=True)
    out_bf16 = jax.block_until_ready(out_bf16)
    assert out_bf16.shape == (1, N, embedding_dim[-1])
    assert jnp.allclose(out_bf16, ref, atol=2e-1, rtol=2e-1), \
        float(jnp.max(jnp.abs(out_bf16 - ref)))

    print("KERNEL_OK")
</pallas_src>

<mosaic_0001>
module attributes {stable_mosaic.version = 11 : i64} {
  func.func @_fused_gcn_kernel(%arg0: memref<1xf32, #tpu.memory_space<smem>>, %arg1: memref<16x16xf32, #tpu.memory_space<vmem>>, %arg2: memref<16x16xf32, #tpu.memory_space<vmem>>, %arg3: memref<16x16xf32, #tpu.memory_space<vmem>>, %arg4: memref<16x32xf32, #tpu.memory_space<vmem>>, %arg5: memref<32x64xf32, #tpu.memory_space<vmem>>, %arg6: memref<64x16xf32, #tpu.memory_space<vmem>>, %arg7: memref<16x16xf32, #tpu.memory_space<vmem>>) attributes {dimension_semantics = [], scalar_prefetch = 0 : i64, scratch_operands = 0 : i64, tpu.core_type = #tpu.core_type<tc>} {
    %c0 = arith.constant 0 : index
    %c0_0 = arith.constant 0 : index
    %0 = vector.load %arg1[%c0, %c0_0] : memref<16x16xf32, #tpu.memory_space<vmem>>, vector<16x16xf32>
    %c0_1 = arith.constant 0 : index
    %c0_2 = arith.constant 0 : index
    %1 = vector.load %arg2[%c0_1, %c0_2] : memref<16x16xf32, #tpu.memory_space<vmem>>, vector<16x16xf32>
    %2 = arith.mulf %0, %1 : vector<16x16xf32>
    %c0_3 = arith.constant 0 : index
    %c0_4 = arith.constant 0 : index
    %3 = vector.load %arg3[%c0_3, %c0_4] : memref<16x16xf32, #tpu.memory_space<vmem>>, vector<16x16xf32>
    %4 = arith.mulf %2, %3 : vector<16x16xf32>
    %cst = arith.constant dense<0.000000e+00> : vector<16xf32>
    %5 = vector.multi_reduction <add>, %4, %cst [1] : vector<16x16xf32> to vector<16xf32>
    %6 = vector.shape_cast %5 : vector<16xf32> to vector<16x1xf32>
    %cst_5 = arith.constant 1.000000e+00 : f32
    %7 = vector.broadcast %cst_5 : f32 to vector<16x1xf32>
    %8 = arith.addf %6, %7 : vector<16x1xf32>
    %9 = math.rsqrt %8 : vector<16x1xf32>
    %c0_6 = arith.constant 0 : index
    %c0_7 = arith.constant 0 : index
    %10 = vector.load %arg4[%c0_6, %c0_7] : memref<16x32xf32, #tpu.memory_space<vmem>>, vector<16x32xf32>
    %c0_8 = arith.constant 0 : index
    %c0_9 = arith.constant 0 : index
    %11 = vector.load %arg5[%c0_8, %c0_9] : memref<32x64xf32, #tpu.memory_space<vmem>>, vector<32x64xf32>
    %12 = vector.broadcast %9 : vector<16x1xf32> to vector<16x32xf32>
    %13 = arith.mulf %12, %10 : vector<16x32xf32>
    %cst_10 = arith.constant dense<0.000000e+00> : vector<16x32xf32>
    %14 = tpu.matmul %4, %13, %cst_10 {dimension_numbers = #tpu.dot_dimension_numbers<[0], [0], [1], [1], [0, 1, 1, 1], [], []>} : vector<16x16xf32>, vector<16x32xf32>, vector<16x32xf32> -> vector<16x32xf32>
    %15 = arith.addf %14, %13 : vector<16x32xf32>
    %16 = vector.broadcast %9 : vector<16x1xf32> to vector<16x32xf32>
    %17 = arith.mulf %16, %15 : vector<16x32xf32>
    %cst_11 = arith.constant dense<0.000000e+00> : vector<16x64xf32>
    %18 = tpu.matmul %17, %11, %cst_11 {dimension_numbers = #tpu.dot_dimension_numbers<[1], [0], [0], [1], [0, 0, 1, 1], [], []>} : vector<16x32xf32>, vector<32x64xf32>, vector<16x64xf32> -> vector<16x64xf32>
    %c0_12 = arith.constant 0 : index
    %c0_13 = arith.constant 0 : index
    %19 = vector.load %arg6[%c0_12, %c0_13] : memref<64x16xf32, #tpu.memory_space<vmem>>, vector<64x16xf32>
    %cst_14 = arith.constant dense<0.000000e+00> : vector<16x16xf32>
    %20 = tpu.matmul %18, %19, %cst_14 {dimension_numbers = #tpu.dot_dimension_numbers<[1], [0], [0], [1], [0, 0, 1, 1], [], []>} : vector<16x64xf32>, vector<64x16xf32>, vector<16x16xf32> -> vector<16x16xf32>
    %21 = vector.broadcast %9 : vector<16x1xf32> to vector<16x16xf32>
    %22 = arith.mulf %21, %20 : vector<16x16xf32>
    %cst_15 = arith.constant dense<0.000000e+00> : vector<16x16xf32>
    %23 = tpu.matmul %4, %22, %cst_15 {dimension_numbers = #tpu.dot_dimension_numbers<[0], [0], [1], [1], [0, 1, 1, 1], [], []>} : vector<16x16xf32>, vector<16x16xf32>, vector<16x16xf32> -> vector<16x16xf32>
    %24 = arith.addf %23, %22 : vector<16x16xf32>
    %25 = vector.broadcast %9 : vector<16x1xf32> to vector<16x16xf32>
    %26 = arith.mulf %25, %24 : vector<16x16xf32>
    %c0_16 = arith.constant 0 : index
    %27 = memref.load %arg0[%c0_16] : memref<1xf32, #tpu.memory_space<smem>>
    %cst_17 = arith.constant 0.000000e+00 : f32
    %28 = vector.broadcast %cst_17 : f32 to vector<16x16xf32>
    %29 = arith.cmpf oge, %26, %28 : vector<16x16xf32>
    %30 = vector.broadcast %27 : f32 to vector<16x16xf32>
    %31 = arith.mulf %30, %26 : vector<16x16xf32>
    %32 = arith.select %29, %26, %31 : vector<16x16xi1>, vector<16x16xf32>
    %c0_18 = arith.constant 0 : index
    %c0_19 = arith.constant 0 : index
    %33 = vector.load %arg7[%c0_18, %c0_19] : memref<16x16xf32, #tpu.memory_space<vmem>>, vector<16x16xf32>
    tpu.vector_store %arg7[%c0_18, %c0_19], %32 {strides = array<i32>} : memref<16x16xf32, #tpu.memory_space<vmem>>, vector<16x16xf32>,
    return
  }
}

</mosaic_0001>

<bundles_post_ra>
// kernel: net_gcn_baseline_forward.1
= control target key start
LH: loop header
LB: loop body
LE: loop exit
PB: predicated region body
PF: predicated region fallthrough
CT: control target
= control target key end

     0   :  { %13 = vsyncpa [#allocation4], 0  ;;  %s730_s0 = inlined_call_operand.<no memory space> [shape: f32[1], index: 0, kind: input, shape index: {}]   ;;  %s731_s1 = inlined_call_operand.vmem [shape: f32[16,16], index: 1, kind: input, shape index: {}]   ;;  %s732_s2 = inlined_call_operand.vmem [shape: f32[16,16], index: 2, kind: input, shape index: {}]   ;;  %s733_s3 = inlined_call_operand.vmem [shape: f32[16,16], index: 3, kind: input, shape index: {}]   ;;  %s734_s4 = inlined_call_operand.hbm [shape: f32[16,32], index: 4, kind: input, shape index: {}]   ;;  %s735_s5 = inlined_call_operand.vmem [shape: f32[32,64], index: 5, kind: input, shape index: {}]   ;;  %s736_s6 = inlined_call_operand.vmem [shape: f32[64,16], index: 6, kind: input, shape index: {}]   ;;  %s737_s7 = inlined_call_operand.hbm [shape: f32[16,16], index: 7, kind: output, shape index: {}]  }
   0x1   :  { %14 = vsyncpa [#allocation5], 0  ;;  %s593_s24 = smov [#allocation3]  }
   0x2   :  { %s28_s25 = sshll.u32 %s593_s24, 4  ;;  %s29_s25 = int_to_ptr.vmem [resolvable:$true] %s28_s25 }
   0x3   :  { %s557_s26 = scalar_lea.vmem %s29_s25, 256  ;;  %p562_p1 = scmp.lt.s32.totalorder %s29_s25, %s29_s25 }
   0x4   :  { %p558_p0 = scmp.ne.s32.totalorder %s29_s25, %s557_s26  ;;  %p563_p2 = scmp.lt.s32.totalorder %s557_s26, %s557_s26 }
   0x6   :  { %p564_p3 = por %p563_p2, %p562_p1 }
   0x8   :  { %p565_p4 = pnand %p564_p3, %p558_p0 }
   0xa   :  { %568 = shalt.err (!%p565_p4)
}
   0xb   :  { %s594_s27 = smov 128   ;;  %s595_s28 = smov 8  }
   0xc   :  { %34 = dma.hbm_to_vmem [thread:$0]  %s734_s4, 256, %s29_s25, [#allocation4], %s594_s27, %s594_s27, %s595_s28  }
   0xd   :  { %589 = dma.done.wait [#allocation4], 256  }
   0xe   :  { %590 = vsyncadd [#allocation4], 4294967040  ;;  %v43_v0 = vld [vmem:[%s731_s1 + $0x8] sm:$0xff]  ;;  %v42_v4 = vld [vmem:[%s731_s1] sm:$0xff]  ;;  %vm52_vm0 = vcmask 130048   ;;  %vm186_vm1 = vcmask 261120   ;;  %v440_v50 = vstv %s730_s0 }
   0xf   :  { %v45_v1 = vld [vmem:[%s732_s2 + $0x8] sm:$0xff]  ;;  %v44_v5 = vld [vmem:[%s732_s2] sm:$0xff]  ;;  %v68_v24 = vld [vmem:[%s735_s5 + $0x18] sm:$0xff]  ;;  %vm276_vm2 = vcmask 523264   ;;  %s596_s18 = smov [#allocation6]  }
  0x10   :  { %v49_v2 = vld [vmem:[%s733_s3 + $0x8] sm:$0xff]  ;;  %v47_v3 = vmul.f32 %v45_v1, %v43_v0  ;;  %v48_v6 = vld [vmem:[%s733_s3] sm:$0xff]  ;;  %v46_v7 = vmul.f32 %v44_v5, %v42_v4  ;;  %v67_v25 = vld [vmem:[%s735_s5 + $0x10] sm:$0xff]  ;;  %s452_s1 = sshll.u32 %s596_s18, 4  ;;  %s453_s1 = int_to_ptr.vmem [resolvable:$true] %s452_s1 }
  0x11   :  { %v64_v17 = vld [vmem:[#allocation3 + $0x8] sm:$0xff]  ;;  %v63_v20 = vld [vmem:[#allocation3] sm:$0xff]  ;;  %v275_v28 = vld [vmem:[%s736_s6 + $0x38] sm:$0xff]  ;;  %s569_s0 = scalar_lea.vmem %s453_s1, 256  ;;  %p574_p6 = scmp.lt.s32.totalorder %s453_s1, %s453_s1 }
  0x12   :  { %v51_v8 = vmul.f32 %v49_v2, %v47_v3  ;;  %v50_v9 = vmul.f32 %v48_v6, %v46_v7  ;;  %v66_v26 = vld [vmem:[%s735_s5 + $0x8] sm:$0xff]  ;;  %v65_v27 = vld [vmem:[%s735_s5] sm:$0xff]  ;;  %v274_v29 = vld [vmem:[%s736_s6 + $0x30] sm:$0xff]  ;;  %514 = vmatprep.subr.mxu0 %v275_v28  ;;  %p570_p5 = scmp.ne.s32.totalorder %s453_s1, %s569_s0  ;;  %p575_p7 = scmp.lt.s32.totalorder %s569_s0, %s569_s0 }
  0x13   :  { %515 = vmatpush3.msra.mxu0 %v275_v28  ;;  %v273_v30 = vld [vmem:[%s736_s6 + $0x28] sm:$0xff]  ;;  %v272_v31 = vld [vmem:[%s736_s6 + $0x20] sm:$0xff]  ;;  %v271_v32 = vld [vmem:[%s736_s6 + $0x18] sm:$0xff] }
  0x14   :  { %v56_v10 = vsel %vm52_vm0, %v51_v8, 0.0  ;;  %71 = vxpose.xlu1.b32.start [1/2] (short) (narrow) %v50_v9, 16  ;;  %v53_v11 = vsel %vm52_vm0, %v50_v9, 0.0  ;;  %516 = vmatprep.subr.mxu0 %v274_v29  ;;  %v270_v33 = vld [vmem:[%s736_s6 + $0x10] sm:$0xff]  ;;  %v269_v40 = vld [vmem:[%s736_s6 + $0x8] sm:$0xff]  ;;  %v268_v41 = vld [vmem:[%s736_s6] sm:$0xff]  ;;  %p576_p8 = por %p575_p7, %p574_p6 }
  0x15   :  { %57 = vadd.xlane.f32.xlu0 %v56_v10  ;;  %517 = vmatpush3.msra.mxu0 %v274_v29 }
  0x16   :  { %518 = vmatprep.subr.mxu0 %v273_v30  ;;  %p577_p9 = pnand %p576_p8, %p570_p5 }
  0x17   :  { %519 = vmatpush3.msra.mxu0 %v273_v30 }
  0x18   :  { %72 = vxpose.xlu1.b32.end [2/2] (short) (narrow) %v51_v8, 16  ;;  %520 = vmatprep.subr.mxu0 %v272_v31 }
  0x19   :  { %54 = vadd.xlane.f32.xlu0 %v53_v11  ;;  %521 = vmatpush3.msra.mxu0 %v272_v31 }
  0x1a   :  { %522 = vmatprep.subr.mxu0 %v271_v32 }
  0x1b   :  { %523 = vmatpush3.msra.mxu0 %v271_v32 }
  0x1c   :  { %524 = vmatprep.subr.mxu0 %v270_v33 }
  0x1d   :  { %525 = vmatpush3.msra.mxu0 %v270_v33 }
  0x1e   :  { %526 = vmatprep.subr.mxu0 %v269_v40 }
  0x1f   :  { %527 = vmatpush3.msra.mxu0 %v269_v40 }
  0x20   :  { %528 = vmatprep.subr.mxu0 %v268_v41 }
  0x21   :  { %529 = vmatpush3.msra.mxu0 %v268_v41 }
  0x90   :  { %v87_v12 = vpop.trf.xlu1 }
  0x91   :  { %500 = vmatprep.mubr.msk.f32.mxu1 %vm52_vm0, %v87_v12 }
  0x94   :  { %v670_v23 = vpop.trf.xlu1 }
  0x9e   :  { %v58_v13 = vpop.xlane.xlu0 %57 }
  0x9f   :  { %v60_v14 = vadd.f32 1.0, %v58_v13 }
  0xa1   :  { %545 = vrsqrt.f32 %v60_v14 }
  0xa2   :  { %v55_v15 = vpop.xlane.xlu0 %54 }
  0xa3   :  { %v59_v16 = vadd.f32 1.0, %v55_v15 }
  0xa5   :  { %547 = vrsqrt.f32 %v59_v16 }
  0xae   :  { %v664_v18 = vpop.eup %545 }
  0xaf   :  { %v70_v19 = vmul.f32 %v664_v18, %v64_v17 }
  0xb1   :  { %496 = vmatprep.subr.mxu1 %v70_v19 }
  0xb2   :  { %v667_v21 = vpop.eup %547  ;;  %497 = vmatpush3.msra.mxu1 %v70_v19 }
  0xb3   :  { %v69_v22 = vmul.f32 %v667_v21, %v63_v20 }
  0xb5   :  { %498 = vmatprep.subr.mxu1 %v69_v22 }
  0xb6   :  { %499 = vmatpush3.msra.mxu1 %v69_v22 }
  0xb7   :  { %501 = vmatmul.mubr.msk.f32.vlgmr.msra.gmra.mxu1 %vm52_vm0, %v670_v23  ;;  %503 = vmatprep.subr.mxu1 %v68_v24 }
  0xb8   :  { %504 = vmatpush3.msra.mxu1 %v68_v24 }
  0xb9   :  { %505 = vmatprep.subr.mxu1 %v67_v25 }
  0xba   :  { %506 = vmatpush3.msra.mxu1 %v67_v25 }
  0xbb   :  { %507 = vmatprep.subr.mxu1 %v66_v26 }
  0xbc   :  { %508 = vmatpush3.msra.mxu1 %v66_v26 }
  0xbd   :  { %509 = vmatprep.subr.mxu1 %v65_v27 }
  0xbe   :  { %510 = vmatpush3.msra.mxu1 %v65_v27 }
 0x177   :  { %v502_v34 = vpop.f32.mrf.mxu1 }
 0x178   :  { %v181_v35 = vadd.f32 %v502_v34, %v70_v19 }
 0x179   :  { %v175_v36 = vpop.f32.mrf.mxu1 }
 0x17a   :  { %v176_v37 = vadd.f32 %v175_v36, %v69_v22  ;;  %v185_v39 = vmul.f32 %v664_v18, %v181_v35 }
 0x17c   :  { %v184_v38 = vmul.f32 %v667_v21, %v176_v37 }
 0x17e   :  { %511 = vmatprep.mubr.msk.f32.mxu1 %vm186_vm1, %v184_v38 }
 0x17f   :  { %512 = vmatmul.mubr.msk.f32.vlgmr.msra.gmra.mxu1 %vm186_vm1, %v185_v39 }
 0x180   :  { %537 = vmatprep.mubr.msk.f32.mxu1 %vm52_vm0, %v87_v12 }
 0x23f   :  { %v513_v42 = vpop.f32.mrf.mxu1 }
 0x241   :  { %v259_v43 = vpop.f32.mrf.mxu1 }
 0x242   :  { %530 = vmatprep.mubr.msk.f32.mxu0 %vm276_vm2, %v259_v43 }
 0x243   :  { %531 = vmatmul.mubr.msk.f32.vlgmr.msra.gmra.mxu0 %vm276_vm2, %v513_v42 }
 0x303   :  { %v532_v44 = vpop.f32.mrf.mxu0 }
 0x304   :  { %v359_v45 = vmul.f32 %v664_v18, %v532_v44 }
 0x305   :  { %v349_v46 = vpop.f32.mrf.mxu0 }
 0x306   :  { %v358_v47 = vmul.f32 %v667_v21, %v349_v46  ;;  %533 = vmatprep.subr.mxu1 %v359_v45 }
 0x307   :  { %534 = vmatpush3.msra.mxu1 %v359_v45 }
 0x308   :  { %535 = vmatprep.subr.mxu1 %v358_v47 }
 0x309   :  { %536 = vmatpush3.msra.mxu1 %v358_v47 }
 0x30a   :  { %538 = vmatmul.mubr.msk.f32.vlgmr.msra.gmra.mxu1 %vm52_vm0, %v670_v23 }
 0x3ca   :  { %v539_v48 = vpop.f32.mrf.mxu1 }
 0x3cb   :  { %v432_v49 = vadd.f32 %v539_v48, %v359_v45 }
 0x3cc   :  { %v426_v51 = vpop.f32.mrf.mxu1 }
 0x3cd   :  { %v436_v52 = vmul.f32 %v664_v18, %v432_v49  ;;  %v427_v53 = vadd.f32 %v426_v51, %v358_v47 }
 0x3cf   :  { %vm439_vm3 = vcmp.ge.f32.partialorder %v436_v52, 0.0  ;;  %v442_v54 = vmul.f32 %v440_v50, %v436_v52  ;;  %v435_v55 = vmul.f32 %v667_v21, %v427_v53 }
 0x3d1   :  { %vm438_vm4 = vcmp.ge.f32.partialorder %v435_v55, 0.0  ;;  %v441_v56 = vmul.f32 %v440_v50, %v435_v55  ;;  %v444_v57 = vsel %vm439_vm3, %v436_v52, %v442_v54 }
 0x3d2   :  { %446 = vst.msk [vmem:[#allocation6 + $0x8] sm:$0xff] %vm52_vm0, %v444_v57 }
 0x3d3   :  { %v443_v58 = vsel %vm438_vm4, %v435_v55, %v441_v56 }
 0x3d4   :  { %445 = vst.msk [vmem:[#allocation6] sm:$0xff] %vm52_vm0, %v443_v58 }
 0x3d5   :  { %580 = shalt.err (!%p577_p9)
}
 0x3d6   :  { %458 = dma.vmem_to_hbm [thread:$0]  %s453_s1, 256, %s737_s7, [#allocation5], %s594_s27, %s594_s27, %s595_s28  }
 0x3d7   :  { %591 = dma.done.wait [#allocation5], 256  }
 0x3d8   :  { %592 = vsyncadd [#allocation5], 4294967040 }
 0x3d9   :  { %462 = vsyncpa [#allocation4], 1 }
 0x3da   :  { %463 = vsyncpa [#allocation5], 1 }

</bundles_post_ra>
